<compile_context>
chip_gen: v6e
topology: v6e:2x2x1
jax: 0.10.0
libtpu: 0.0.40
codegen_flags: <defaults>
</compile_context>

<pallas_src>
from math import exp

import jax
import jax.numpy as jnp
from jax.experimental import pallas as pl
from jax.experimental.pallas import tpu as pltpu

WINDOW_SIZE = 11
SIGMA = 1.5
C1 = 0.01 ** 2
C2 = 0.03 ** 2

MAX_PLANES_PER_STEP = 4  # static unroll factor per grid step


def _gaussian_1d(window_size, sigma):
    g = [exp(-((x - window_size // 2) ** 2) / float(2 * sigma ** 2))
         for x in range(window_size)]
    s = sum(g)
    return [v / s for v in g]


GAUSS_1D = _gaussian_1d(WINDOW_SIZE, SIGMA)  # sums to 1; outer product == 2D window


def _band_matrix(n, pad):
    """Banded (n,n) matrix B with B[k,j] = g[k-j+pad] for |k-j| <= pad, else 0.

    X @ B == horizontal 1-D Gaussian conv of X with zero ("same") padding and,
    because the Gaussian is symmetric, B @ X == the vertical conv.  Zero
    padding (F.conv2d padding=window_size//2) is folded into the band edges.
    """
    g = jnp.asarray(GAUSS_1D, dtype=jnp.float32)
    idx = jnp.arange(n)
    diff = idx[:, None] - idx[None, :]
    tap = jnp.clip(diff + pad, 0, 2 * pad)
    return jnp.where(jnp.abs(diff) <= pad, g[tap], 0.0).astype(jnp.float32)


def _largest_divisor_leq(n, cap):
    best = 1
    for d in range(1, min(n, cap) + 1):
        if n % d == 0:
            best = d
    return best


def _ssim_partial_kernel(img1_ref, img2_ref, av_ref, ah_ref, out_ref):
    """Partial sum of the SSIM map over this grid step's batch of image planes."""
    av = av_ref[...]          # (H, H) f32 banded Gaussian (vertical taps)
    ah = ah_ref[...]          # (W, W) f32 banded Gaussian (horizontal taps)

    def gauss_conv(u):        # 11x11 "same" depthwise conv as two MXU matmuls
        t = jnp.dot(av, u, preferred_element_type=jnp.float32)
        return jnp.dot(t, ah, preferred_element_type=jnp.float32)

    num_planes = img1_ref.shape[0]       # static P (small, unrolled)
    total = jnp.float32(0.0)
    for p in range(num_planes):
        x1 = img1_ref[p].astype(jnp.float32)   # (H, W), cast on load
        x2 = img2_ref[p].astype(jnp.float32)

        mu1 = gauss_conv(x1)
        mu2 = gauss_conv(x2)
        e11 = gauss_conv(x1 * x1)
        e22 = gauss_conv(x2 * x2)
        e12 = gauss_conv(x1 * x2)

        mu1_sq = mu1 * mu1
        mu2_sq = mu2 * mu2
        mu1_mu2 = mu1 * mu2
        sigma1_sq = e11 - mu1_sq
        sigma2_sq = e22 - mu2_sq
        sigma12 = e12 - mu1_mu2

        numer = (2.0 * mu1_mu2 + C1) * (2.0 * sigma12 + C2)
        denom = (mu1_sq + mu2_sq + C1) * (sigma1_sq + sigma2_sq + C2)
        # EUP reciprocal (exact) instead of a VALU divide.
        ssim_map = numer * pl.reciprocal(denom, approx=False)
        total = total + jnp.sum(ssim_map)

    out_ref[...] = jnp.broadcast_to(total, (1, 1, 1))


def ssim_loss(img1, img2, window_size=WINDOW_SIZE):
    """Pallas implementation of SSIM_LOSS.forward: (1 - mean(ssim_map)) / 2."""
    B, C, H, W = img1.shape
    pad = window_size // 2
    bc = B * C
    x1 = img1.reshape(bc, H, W)          # no host-side pad, no host-side cast
    x2 = img2.reshape(bc, H, W)

    av = _band_matrix(H, pad)            # (H, H)
    ah = _band_matrix(W, pad)            # (W, W)

    P = _largest_divisor_leq(bc, MAX_PLANES_PER_STEP)
    G = bc // P

    itemsize = jnp.dtype(img1.dtype).itemsize
    cost = pl.CostEstimate(
        flops=int(bc * (5 * 2 * H * W * (H + W) + 30 * H * W)),
        transcendentals=int(bc * H * W),
        bytes_accessed=int(2 * bc * H * W * itemsize + 4 * (H * H + W * W) + 4 * G),
    )

    # TODO(synk): for very large H, W, additionally tile the spatial plane
    # (row tiles with a 10-row halo) so one step's working set fits the v7x
    # 64 MiB VMEM budget.
    partials = pl.pallas_call(
        _ssim_partial_kernel,
        out_shape=jax.ShapeDtypeStruct((G, 1, 1), jnp.float32),
        grid=(G,),
        in_specs=[
            pl.BlockSpec((P, H, W), lambda i: (i, 0, 0)),
            pl.BlockSpec((P, H, W), lambda i: (i, 0, 0)),
            pl.BlockSpec((H, H), lambda i: (0, 0)),
            pl.BlockSpec((W, W), lambda i: (0, 0)),
        ],
        out_specs=pl.BlockSpec((1, 1, 1), lambda i: (i, 0, 0)),
        compiler_params=pltpu.CompilerParams(
            dimension_semantics=("parallel",)),
        cost_estimate=cost,
    )(x1, x2, av, ah)

    ssim_mean = jnp.sum(partials) / jnp.float32(bc * H * W)   # size_average=True
    loss = (1.0 - ssim_mean) / 2.0
    return jnp.mean(loss)                                      # torch.mean of a scalar


def _ssim_loss_reference(img1, img2, window_size=WINDOW_SIZE):
    """Pure-JAX reference using a real 2-D depthwise conv (matches F.conv2d)."""
    B, C, H, W = img1.shape
    assert C == 1
    g = jnp.asarray(GAUSS_1D, dtype=jnp.float32)
    w2d = jnp.outer(g, g)[None, None]  # (1,1,11,11) OIHW
    pad = window_size // 2

    def conv(x):
        return jax.lax.conv_general_dilated(
            x.astype(jnp.float32), w2d, window_strides=(1, 1),
            padding=[(pad, pad), (pad, pad)],
            dimension_numbers=("NCHW", "OIHW", "NCHW"),
            precision=jax.lax.Precision.HIGHEST)

    mu1, mu2 = conv(img1), conv(img2)
    mu1_sq, mu2_sq, mu1_mu2 = mu1 * mu1, mu2 * mu2, mu1 * mu2
    s1 = conv(img1 * img1) - mu1_sq
    s2 = conv(img2 * img2) - mu2_sq
    s12 = conv(img1 * img2) - mu1_mu2
    ssim_map = ((2 * mu1_mu2 + C1) * (2 * s12 + C2)) / (
        (mu1_sq + mu2_sq + C1) * (s1 + s2 + C2))
    return (1.0 - jnp.mean(ssim_map)) / 2.0


if __name__ == "__main__":
    key = jax.random.PRNGKey(0)
    k1, k2 = jax.random.split(key)
    # SSIM module hard-codes a channel=1 window -> inputs must have C == 1.
    shape = (2, 1, 16, 16)
    img1 = jax.random.uniform(k1, shape, dtype=jnp.float32)
    img2 = jax.random.uniform(k2, shape, dtype=jnp.float32)

    loss = jax.block_until_ready(ssim_loss(img1, img2))
    ref = jax.block_until_ready(_ssim_loss_reference(img1, img2))

    assert jnp.isfinite(loss), "non-finite loss"
    assert jnp.allclose(loss, ref, rtol=5e-4, atol=1e-5), (loss, ref)
    print("KERNEL_OK")
</pallas_src>

<mosaic_0001>
module attributes {stable_mosaic.version = 11 : i64} {
  func.func @_ssim_partial_kernel(%arg0: i32, %arg1: memref<2x16x16xf32, #tpu.memory_space<vmem>>, %arg2: memref<2x16x16xf32, #tpu.memory_space<vmem>>, %arg3: memref<16x16xf32, #tpu.memory_space<vmem>>, %arg4: memref<16x16xf32, #tpu.memory_space<vmem>>, %arg5: memref<1x1x1xf32, #tpu.memory_space<vmem>>) attributes {dimension_semantics = [#tpu.dimension_semantics<parallel>], iteration_bounds = array<i64: 1>, scalar_prefetch = 0 : i64, scratch_operands = 0 : i64, tpu.core_type = #tpu.core_type<tc>, window_params = [{transform_indices = @transform_0, window_bounds = array<i64: 2, 16, 16>}, {transform_indices = @transform_1, window_bounds = array<i64: 2, 16, 16>}, {pipeline_mode = #tpu.pipeline_mode<synchronous>, transform_indices = @transform_2, window_bounds = array<i64: 16, 16>}, {pipeline_mode = #tpu.pipeline_mode<synchronous>, transform_indices = @transform_3, window_bounds = array<i64: 16, 16>}, {transform_indices = @transform_4, window_bounds = array<i64: 1, 1, 1>}]} {
    %c0 = arith.constant 0 : index
    %c0_0 = arith.constant 0 : index
    %0 = vector.load %arg3[%c0, %c0_0] : memref<16x16xf32, #tpu.memory_space<vmem>>, vector<16x16xf32>
    %c0_1 = arith.constant 0 : index
    %c0_2 = arith.constant 0 : index
    %1 = vector.load %arg4[%c0_1, %c0_2] : memref<16x16xf32, #tpu.memory_space<vmem>>, vector<16x16xf32>
    %c0_3 = arith.constant 0 : index
    %c0_4 = arith.constant 0 : index
    %c0_5 = arith.constant 0 : index
    %2 = vector.load %arg1[%c0_3, %c0_4, %c0_5] : memref<2x16x16xf32, #tpu.memory_space<vmem>>, vector<1x16x16xf32>
    %3 = vector.shape_cast %2 : vector<1x16x16xf32> to vector<16x16xf32>
    %c0_6 = arith.constant 0 : index
    %c0_7 = arith.constant 0 : index
    %c0_8 = arith.constant 0 : index
    %4 = vector.load %arg2[%c0_6, %c0_7, %c0_8] : memref<2x16x16xf32, #tpu.memory_space<vmem>>, vector<1x16x16xf32>
    %5 = vector.shape_cast %4 : vector<1x16x16xf32> to vector<16x16xf32>
    %cst = arith.constant dense<0.000000e+00> : vector<16x16xf32>
    %6 = tpu.matmul %0, %3, %cst {dimension_numbers = #tpu.dot_dimension_numbers<[1], [0], [0], [1], [0, 0, 1, 1], [], []>} : vector<16x16xf32>, vector<16x16xf32>, vector<16x16xf32> -> vector<16x16xf32>
    %cst_9 = arith.constant dense<0.000000e+00> : vector<16x16xf32>
    %7 = tpu.matmul %6, %1, %cst_9 {dimension_numbers = #tpu.dot_dimension_numbers<[1], [0], [0], [1], [0, 0, 1, 1], [], []>} : vector<16x16xf32>, vector<16x16xf32>, vector<16x16xf32> -> vector<16x16xf32>
    %cst_10 = arith.constant dense<0.000000e+00> : vector<16x16xf32>
    %8 = tpu.matmul %0, %5, %cst_10 {dimension_numbers = #tpu.dot_dimension_numbers<[1], [0], [0], [1], [0, 0, 1, 1], [], []>} : vector<16x16xf32>, vector<16x16xf32>, vector<16x16xf32> -> vector<16x16xf32>
    %cst_11 = arith.constant dense<0.000000e+00> : vector<16x16xf32>
    %9 = tpu.matmul %8, %1, %cst_11 {dimension_numbers = #tpu.dot_dimension_numbers<[1], [0], [0], [1], [0, 0, 1, 1], [], []>} : vector<16x16xf32>, vector<16x16xf32>, vector<16x16xf32> -> vector<16x16xf32>
    %10 = arith.mulf %3, %3 : vector<16x16xf32>
    %cst_12 = arith.constant dense<0.000000e+00> : vector<16x16xf32>
    %11 = tpu.matmul %0, %10, %cst_12 {dimension_numbers = #tpu.dot_dimension_numbers<[1], [0], [0], [1], [0, 0, 1, 1], [], []>} : vector<16x16xf32>, vector<16x16xf32>, vector<16x16xf32> -> vector<16x16xf32>
    %cst_13 = arith.constant dense<0.000000e+00> : vector<16x16xf32>
    %12 = tpu.matmul %11, %1, %cst_13 {dimension_numbers = #tpu.dot_dimension_numbers<[1], [0], [0], [1], [0, 0, 1, 1], [], []>} : vector<16x16xf32>, vector<16x16xf32>, vector<16x16xf32> -> vector<16x16xf32>
    %13 = arith.mulf %5, %5 : vector<16x16xf32>
    %cst_14 = arith.constant dense<0.000000e+00> : vector<16x16xf32>
    %14 = tpu.matmul %0, %13, %cst_14 {dimension_numbers = #tpu.dot_dimension_numbers<[1], [0], [0], [1], [0, 0, 1, 1], [], []>} : vector<16x16xf32>, vector<16x16xf32>, vector<16x16xf32> -> vector<16x16xf32>
    %cst_15 = arith.constant dense<0.000000e+00> : vector<16x16xf32>
    %15 = tpu.matmul %14, %1, %cst_15 {dimension_numbers = #tpu.dot_dimension_numbers<[1], [0], [0], [1], [0, 0, 1, 1], [], []>} : vector<16x16xf32>, vector<16x16xf32>, vector<16x16xf32> -> vector<16x16xf32>
    %16 = arith.mulf %3, %5 : vector<16x16xf32>
    %cst_16 = arith.constant dense<0.000000e+00> : vector<16x16xf32>
    %17 = tpu.matmul %0, %16, %cst_16 {dimension_numbers = #tpu.dot_dimension_numbers<[1], [0], [0], [1], [0, 0, 1, 1], [], []>} : vector<16x16xf32>, vector<16x16xf32>, vector<16x16xf32> -> vector<16x16xf32>
    %cst_17 = arith.constant dense<0.000000e+00> : vector<16x16xf32>
    %18 = tpu.matmul %17, %1, %cst_17 {dimension_numbers = #tpu.dot_dimension_numbers<[1], [0], [0], [1], [0, 0, 1, 1], [], []>} : vector<16x16xf32>, vector<16x16xf32>, vector<16x16xf32> -> vector<16x16xf32>
    %19 = arith.mulf %7, %7 : vector<16x16xf32>
    %20 = arith.mulf %9, %9 : vector<16x16xf32>
    %21 = arith.mulf %7, %9 : vector<16x16xf32>
    %22 = arith.subf %12, %19 : vector<16x16xf32>
    %23 = arith.subf %15, %20 : vector<16x16xf32>
    %24 = arith.subf %18, %21 : vector<16x16xf32>
    %cst_18 = arith.constant 2.000000e+00 : f32
    %25 = vector.broadcast %cst_18 : f32 to vector<16x16xf32>
    %26 = arith.mulf %25, %21 : vector<16x16xf32>
    %cst_19 = arith.constant 9.99999974E-5 : f32
    %27 = vector.broadcast %cst_19 : f32 to vector<16x16xf32>
    %28 = arith.addf %26, %27 : vector<16x16xf32>
    %cst_20 = arith.constant 2.000000e+00 : f32
    %29 = vector.broadcast %cst_20 : f32 to vector<16x16xf32>
    %30 = arith.mulf %29, %24 : vector<16x16xf32>
    %cst_21 = arith.constant 8.99999984E-4 : f32
    %31 = vector.broadcast %cst_21 : f32 to vector<16x16xf32>
    %32 = arith.addf %30, %31 : vector<16x16xf32>
    %33 = arith.mulf %28, %32 : vector<16x16xf32>
    %34 = arith.addf %19, %20 : vector<16x16xf32>
    %cst_22 = arith.constant 9.99999974E-5 : f32
    %35 = vector.broadcast %cst_22 : f32 to vector<16x16xf32>
    %36 = arith.addf %34, %35 : vector<16x16xf32>
    %37 = arith.addf %22, %23 : vector<16x16xf32>
    %cst_23 = arith.constant 8.99999984E-4 : f32
    %38 = vector.broadcast %cst_23 : f32 to vector<16x16xf32>
    %39 = arith.addf %37, %38 : vector<16x16xf32>
    %40 = arith.mulf %36, %39 : vector<16x16xf32>
    %41 = tpu.reciprocal %40 : vector<16x16xf32> -> vector<16x16xf32>
    %42 = arith.mulf %33, %41 : vector<16x16xf32>
    %43 = vector.shape_cast %42 : vector<16x16xf32> to vector<1x16x16xf32>
    %cst_24 = arith.constant dense<0.000000e+00> : vector<1xf32>
    %44 = vector.multi_reduction <add>, %43, %cst_24 [1, 2] : vector<1x16x16xf32> to vector<1xf32>
    %45 = vector.shape_cast %44 : vector<1xf32> to vector<1x1x1xf32>
    %46 = vector.extract %45[0, 0, 0] : f32 from vector<1x1x1xf32>
    %cst_25 = arith.constant 0.000000e+00 : f32
    %47 = arith.addf %cst_25, %46 : f32
    %c1 = arith.constant 1 : index
    %c0_26 = arith.constant 0 : index
    %c0_27 = arith.constant 0 : index
    %48 = vector.load %arg1[%c1, %c0_26, %c0_27] : memref<2x16x16xf32, #tpu.memory_space<vmem>>, vector<1x16x16xf32>
    %49 = vector.shape_cast %48 : vector<1x16x16xf32> to vector<16x16xf32>
    %c1_28 = arith.constant 1 : index
    %c0_29 = arith.constant 0 : index
    %c0_30 = arith.constant 0 : index
    %50 = vector.load %arg2[%c1_28, %c0_29, %c0_30] : memref<2x16x16xf32, #tpu.memory_space<vmem>>, vector<1x16x16xf32>
    %51 = vector.shape_cast %50 : vector<1x16x16xf32> to vector<16x16xf32>
    %cst_31 = arith.constant dense<0.000000e+00> : vector<16x16xf32>
    %52 = tpu.matmul %0, %49, %cst_31 {dimension_numbers = #tpu.dot_dimension_numbers<[1], [0], [0], [1], [0, 0, 1, 1], [], []>} : vector<16x16xf32>, vector<16x16xf32>, vector<16x16xf32> -> vector<16x16xf32>
    %cst_32 = arith.constant dense<0.000000e+00> : vector<16x16xf32>
    %53 = tpu.matmul %52, %1, %cst_32 {dimension_numbers = #tpu.dot_dimension_numbers<[1], [0], [0], [1], [0, 0, 1, 1], [], []>} : vector<16x16xf32>, vector<16x16xf32>, vector<16x16xf32> -> vector<16x16xf32>
    %cst_33 = arith.constant dense<0.000000e+00> : vector<16x16xf32>
    %54 = tpu.matmul %0, %51, %cst_33 {dimension_numbers = #tpu.dot_dimension_numbers<[1], [0], [0], [1], [0, 0, 1, 1], [], []>} : vector<16x16xf32>, vector<16x16xf32>, vector<16x16xf32> -> vector<16x16xf32>
    %cst_34 = arith.constant dense<0.000000e+00> : vector<16x16xf32>
    %55 = tpu.matmul %54, %1, %cst_34 {dimension_numbers = #tpu.dot_dimension_numbers<[1], [0], [0], [1], [0, 0, 1, 1], [], []>} : vector<16x16xf32>, vector<16x16xf32>, vector<16x16xf32> -> vector<16x16xf32>
    %56 = arith.mulf %49, %49 : vector<16x16xf32>
    %cst_35 = arith.constant dense<0.000000e+00> : vector<16x16xf32>
    %57 = tpu.matmul %0, %56, %cst_35 {dimension_numbers = #tpu.dot_dimension_numbers<[1], [0], [0], [1], [0, 0, 1, 1], [], []>} : vector<16x16xf32>, vector<16x16xf32>, vector<16x16xf32> -> vector<16x16xf32>
    %cst_36 = arith.constant dense<0.000000e+00> : vector<16x16xf32>
    %58 = tpu.matmul %57, %1, %cst_36 {dimension_numbers = #tpu.dot_dimension_numbers<[1], [0], [0], [1], [0, 0, 1, 1], [], []>} : vector<16x16xf32>, vector<16x16xf32>, vector<16x16xf32> -> vector<16x16xf32>
    %59 = arith.mulf %51, %51 : vector<16x16xf32>
    %cst_37 = arith.constant dense<0.000000e+00> : vector<16x16xf32>
    %60 = tpu.matmul %0, %59, %cst_37 {dimension_numbers = #tpu.dot_dimension_numbers<[1], [0], [0], [1], [0, 0, 1, 1], [], []>} : vector<16x16xf32>, vector<16x16xf32>, vector<16x16xf32> -> vector<16x16xf32>
    %cst_38 = arith.constant dense<0.000000e+00> : vector<16x16xf32>
    %61 = tpu.matmul %60, %1, %cst_38 {dimension_numbers = #tpu.dot_dimension_numbers<[1], [0], [0], [1], [0, 0, 1, 1], [], []>} : vector<16x16xf32>, vector<16x16xf32>, vector<16x16xf32> -> vector<16x16xf32>
    %62 = arith.mulf %49, %51 : vector<16x16xf32>
    %cst_39 = arith.constant dense<0.000000e+00> : vector<16x16xf32>
    %63 = tpu.matmul %0, %62, %cst_39 {dimension_numbers = #tpu.dot_dimension_numbers<[1], [0], [0], [1], [0, 0, 1, 1], [], []>} : vector<16x16xf32>, vector<16x16xf32>, vector<16x16xf32> -> vector<16x16xf32>
    %cst_40 = arith.constant dense<0.000000e+00> : vector<16x16xf32>
    %64 = tpu.matmul %63, %1, %cst_40 {dimension_numbers = #tpu.dot_dimension_numbers<[1], [0], [0], [1], [0, 0, 1, 1], [], []>} : vector<16x16xf32>, vector<16x16xf32>, vector<16x16xf32> -> vector<16x16xf32>
    %65 = arith.mulf %53, %53 : vector<16x16xf32>
    %66 = arith.mulf %55, %55 : vector<16x16xf32>
    %67 = arith.mulf %53, %55 : vector<16x16xf32>
    %68 = arith.subf %58, %65 : vector<16x16xf32>
    %69 = arith.subf %61, %66 : vector<16x16xf32>
    %70 = arith.subf %64, %67 : vector<16x16xf32>
    %cst_41 = arith.constant 2.000000e+00 : f32
    %71 = vector.broadcast %cst_41 : f32 to vector<16x16xf32>
    %72 = arith.mulf %71, %67 : vector<16x16xf32>
    %cst_42 = arith.constant 9.99999974E-5 : f32
    %73 = vector.broadcast %cst_42 : f32 to vector<16x16xf32>
    %74 = arith.addf %72, %73 : vector<16x16xf32>
    %cst_43 = arith.constant 2.000000e+00 : f32
    %75 = vector.broadcast %cst_43 : f32 to vector<16x16xf32>
    %76 = arith.mulf %75, %70 : vector<16x16xf32>
    %cst_44 = arith.constant 8.99999984E-4 : f32
    %77 = vector.broadcast %cst_44 : f32 to vector<16x16xf32>
    %78 = arith.addf %76, %77 : vector<16x16xf32>
    %79 = arith.mulf %74, %78 : vector<16x16xf32>
    %80 = arith.addf %65, %66 : vector<16x16xf32>
    %cst_45 = arith.constant 9.99999974E-5 : f32
    %81 = vector.broadcast %cst_45 : f32 to vector<16x16xf32>
    %82 = arith.addf %80, %81 : vector<16x16xf32>
    %83 = arith.addf %68, %69 : vector<16x16xf32>
    %cst_46 = arith.constant 8.99999984E-4 : f32
    %84 = vector.broadcast %cst_46 : f32 to vector<16x16xf32>
    %85 = arith.addf %83, %84 : vector<16x16xf32>
    %86 = arith.mulf %82, %85 : vector<16x16xf32>
    %87 = tpu.reciprocal %86 : vector<16x16xf32> -> vector<16x16xf32>
    %88 = arith.mulf %79, %87 : vector<16x16xf32>
    %89 = vector.shape_cast %88 : vector<16x16xf32> to vector<1x16x16xf32>
    %cst_47 = arith.constant dense<0.000000e+00> : vector<1xf32>
    %90 = vector.multi_reduction <add>, %89, %cst_47 [1, 2] : vector<1x16x16xf32> to vector<1xf32>
    %91 = vector.shape_cast %90 : vector<1xf32> to vector<1x1x1xf32>
    %92 = vector.extract %91[0, 0, 0] : f32 from vector<1x1x1xf32>
    %93 = arith.addf %47, %92 : f32
    %94 = vector.broadcast %93 : f32 to vector<1x1x1xf32>
    %c0_48 = arith.constant 0 : index
    %c0_49 = arith.constant 0 : index
    %c0_50 = arith.constant 0 : index
    %95 = vector.load %arg5[%c0_48, %c0_49, %c0_50] : memref<1x1x1xf32, #tpu.memory_space<vmem>>, vector<1x1x1xf32>
    tpu.vector_store %arg5[%c0_48, %c0_49, %c0_50], %94 {strides = array<i32>} : memref<1x1x1xf32, #tpu.memory_space<vmem>>, vector<1x1x1xf32>,
    return
  }
  func.func @transform_0(%arg0: i32) -> (i32, i32, i32) {
    %c0_i32 = arith.constant 0 : i32
    %c0_i32_0 = arith.constant 0 : i32
    %c0_i32_1 = arith.constant 0 : i32
    return %arg0, %c0_i32, %c0_i32_0 : i32, i32, i32
  }
  func.func @transform_1(%arg0: i32) -> (i32, i32, i32) {
    %c0_i32 = arith.constant 0 : i32
    %c0_i32_0 = arith.constant 0 : i32
    %c0_i32_1 = arith.constant 0 : i32
    return %arg0, %c0_i32, %c0_i32_0 : i32, i32, i32
  }
  func.func @transform_2(%arg0: i32) -> (i32, i32) {
    %c0_i32 = arith.constant 0 : i32
    %c0_i32_0 = arith.constant 0 : i32
    %c0_i32_1 = arith.constant 0 : i32
    return %c0_i32, %c0_i32_0 : i32, i32
  }
  func.func @transform_3(%arg0: i32) -> (i32, i32) {
    %c0_i32 = arith.constant 0 : i32
    %c0_i32_0 = arith.constant 0 : i32
    %c0_i32_1 = arith.constant 0 : i32
    return %c0_i32, %c0_i32_0 : i32, i32
  }
  func.func @transform_4(%arg0: i32) -> (i32, i32, i32) {
    %c0_i32 = arith.constant 0 : i32
    %c0_i32_0 = arith.constant 0 : i32
    %c0_i32_1 = arith.constant 0 : i32
    return %arg0, %c0_i32, %c0_i32_0 : i32, i32, i32
  }
}

</mosaic_0001>

<bundles_post_ra>
// kernel: tpu_custom_call.1
= control target key start
LH: loop header
LB: loop body
LE: loop exit
PB: predicated region body
PF: predicated region fallthrough
CT: control target
= control target key end

     0   :  { %9 = vsyncpa [#allocation3], 0  ;;  %s2342_s0 = inlined_call_operand.hbm [shape: f32[2,16,16], index: 0, kind: input, shape index: {}]   ;;  %s2343_s1 = inlined_call_operand.hbm [shape: f32[2,16,16], index: 1, kind: input, shape index: {}]   ;;  %s2344_s2 = inlined_call_operand.hbm [shape: f32[16,16], index: 2, kind: input, shape index: {}]   ;;  %s2345_s3 = inlined_call_operand.hbm [shape: f32[16,16], index: 3, kind: input, shape index: {}]   ;;  %s2346_s4 = inlined_call_operand.hbm [shape: f32[1,1,1], index: 4, kind: output, shape index: {}]  }
   0x1   :  { %10 = vsyncpa [#allocation6], 0 }
   0x2   :  { %11 = vsyncpa [#allocation9], 0 }
   0x3   :  { %12 = vsyncpa [#allocation4], 0  ;;  %s2171_s15 = smov [#allocation5]   ;;  %s2172_s17 = smov [#allocation2]  }
   0x4   :  { %s30_s16 = sshll.u32 %s2171_s15, 4  ;;  %s18_s18 = sshll.u32 %s2172_s17, 4  ;;  %s31_s16 = int_to_ptr.vmem [resolvable:$true] %s30_s16  ;;  %s19_s18 = int_to_ptr.vmem [resolvable:$true] %s18_s18 }
   0x5   :  { %s2071_s19 = scalar_lea.vmem %s31_s16, 512  ;;  %p2076_p1 = scmp.lt.s32.totalorder %s31_s16, %s31_s16 }
   0x6   :  { %p2072_p0 = scmp.ne.s32.totalorder %s31_s16, %s2071_s19  ;;  %p2077_p2 = scmp.lt.s32.totalorder %s2071_s19, %s2071_s19 }
   0x8   :  { %p2078_p3 = por %p2077_p2, %p2076_p1 }
   0xa   :  { %p2079_p4 = pnand %p2078_p3, %p2072_p0 }
   0xc   :  { %2082 = shalt.err (!%p2079_p4)
}
   0xd   :  { %s2173_s20 = smov 128   ;;  %s2174_s21 = smov 8  }
   0xe   :  { %36 = dma.hbm_to_vmem [thread:$0]  %s2343_s1, 512, %s31_s16, [#allocation6], %s2173_s20, %s2173_s20, %s2174_s21  }
   0xf   :  { %s2091_s24 = scalar_lea.vmem %s19_s18, 512  ;;  %p2096_p6 = scmp.lt.s32.totalorder %s19_s18, %s19_s18 }
  0x10   :  { %p2092_p5 = scmp.ne.s32.totalorder %s19_s18, %s2091_s24  ;;  %p2097_p7 = scmp.lt.s32.totalorder %s2091_s24, %s2091_s24 }
  0x12   :  { %p2098_p8 = por %p2097_p7, %p2096_p6 }
  0x14   :  { %p2099_p9 = pnand %p2098_p8, %p2092_p5 }
  0x16   :  { %2102 = shalt.err (!%p2099_p9)
}
  0x17   :  { %24 = dma.hbm_to_vmem [thread:$0]  %s2342_s0, 512, %s19_s18, [#allocation3], %s2173_s20, %s2173_s20, %s2174_s21  }
  0x18   :  { %s2175_s27 = smov [#allocation7]   ;;  %s2176_s29 = smov [#allocation8]  }
  0x19   :  { %s42_s28 = sshll.u32 %s2175_s27, 4  ;;  %s54_s30 = sshll.u32 %s2176_s29, 4  ;;  %s43_s28 = int_to_ptr.vmem [resolvable:$true] %s42_s28  ;;  %s55_s30 = int_to_ptr.vmem [resolvable:$true] %s54_s30 }
  0x1a   :  { %s2111_s1 = scalar_lea.vmem %s43_s28, 256  ;;  %p2116_p11 = scmp.lt.s32.totalorder %s43_s28, %s43_s28 }
  0x1b   :  { %p2112_p10 = scmp.ne.s32.totalorder %s43_s28, %s2111_s1  ;;  %p2117_p12 = scmp.lt.s32.totalorder %s2111_s1, %s2111_s1 }
  0x1d   :  { %p2118_p13 = por %p2117_p12, %p2116_p11 }
  0x1f   :  { %p2119_p0 = pnand %p2118_p13, %p2112_p10 }
  0x21   :  { %2122 = shalt.err (!%p2119_p0)
}
  0x22   :  { %48 = dma.hbm_to_vmem [thread:$0]  %s2344_s2, 256, %s43_s28, [#allocation6], %s2173_s20, %s2173_s20, %s2174_s21  }
  0x23   :  { %s2131_s0 = scalar_lea.vmem %s55_s30, 256  ;;  %p2136_p2 = scmp.lt.s32.totalorder %s55_s30, %s55_s30 }
  0x24   :  { %p2132_p1 = scmp.ne.s32.totalorder %s55_s30, %s2131_s0  ;;  %p2137_p3 = scmp.lt.s32.totalorder %s2131_s0, %s2131_s0 }
  0x26   :  { %p2138_p4 = por %p2137_p3, %p2136_p2 }
  0x28   :  { %p2139_p5 = pnand %p2138_p4, %p2132_p1 }
  0x2a   :  { %2142 = shalt.err (!%p2139_p5)
}
  0x2b   :  { %60 = dma.hbm_to_vmem [thread:$0]  %s2345_s3, 256, %s55_s30, [#allocation9], %s2173_s20, %s2173_s20, %s2174_s21  }
  0x2c   :  { %2163 = dma.done.wait [#allocation3], 512  }
  0x2d   :  { %2164 = vsyncadd [#allocation3], 4294966784 }
  0x2e   :  { %2165 = dma.done.wait [#allocation6], 768  }
  0x2f   :  { %2166 = vsyncadd [#allocation6], 4294966528 }
  0x30   :  { %2167 = dma.done.wait [#allocation9], 256  }
  0x31   :  { %2168 = vsyncadd [#allocation9], 4294967040  ;;  %vm81_vm0 = vcmask 130048   ;;  %v78_v0 = vld [vmem:[#allocation2 + $0x8] sm:$0xff]  ;;  %v77_v1 = vld [vmem:[#allocation2] sm:$0xff]  ;;  %s2177_s3 = smov [#allocation10]  }
  0x32   :  { %v2227_v2 = vld [vmem:[#allocation7] sm:$0xff]  ;;  %1904 = vmatprep.subr.mxu0 %v78_v0  ;;  %v2231_v3 = vld [vmem:[#allocation7 + $0x8] sm:$0xff]  ;;  %v401_v6 = vmul.f32 %v78_v0, %v78_v0  ;;  %v400_v7 = vmul.f32 %v77_v1, %v77_v1  ;;  %v925_v12 = vld [vmem:[#allocation2 + $0x18] sm:$0xff]  ;;  %s1773_s9 = sshll.u32 %s2177_s3, 4  ;;  %vm1765_vm1 = vcmask 0   ;;  %s1774_s9 = int_to_ptr.vmem [resolvable:$true] %s1773_s9 }
  0x33   :  { %1908 = vmatprep.mubr.msk.f32.mxu0 %vm81_vm0, %v2227_v2  ;;  %1905 = vmatpush3.msra.mxu0 %v78_v0  ;;  %v80_v4 = vld [vmem:[#allocation5 + $0x8] sm:$0xff]  ;;  %v79_v5 = vld [vmem:[#allocation5] sm:$0xff]  ;;  %v924_v13 = vld [vmem:[#allocation2 + $0x10] sm:$0xff]  ;;  %v1242_v16 = vmul.f32 %v925_v12, %v925_v12  ;;  %s2143_s12 = scalar_lea.vmem %s1774_s9, 16  ;;  %s2147_s13 = scalar_lea.vmem %s1774_s9, 32 }
  0x34   :  { %1906 = vmatprep.subr.mxu0 %v77_v1  ;;  %v559_v8 = vmul.f32 %v80_v4, %v80_v4  ;;  %v558_v9 = vmul.f32 %v79_v5, %v79_v5  ;;  %v717_v10 = vmul.f32 %v80_v4, %v78_v0  ;;  %v716_v11 = vmul.f32 %v79_v5, %v77_v1  ;;  %v928_v14 = vld [vmem:[#allocation5 + $0x18] sm:$0xff]  ;;  %v927_v15 = vld [vmem:[#allocation5 + $0x10] sm:$0xff]  ;;  %p2144_p6 = scmp.ne.s32.totalorder %s1774_s9, %s2143_s12  ;;  %p2148_p7 = scmp.lt.s32.totalorder %s1774_s9, %s1774_s9 }
  0x35   :  { %1907 = vmatpush3.msra.mxu0 %v77_v1  ;;  %v1241_v17 = vmul.f32 %v924_v13, %v924_v13  ;;  %v1400_v18 = vmul.f32 %v928_v14, %v928_v14  ;;  %v1399_v19 = vmul.f32 %v927_v15, %v927_v15  ;;  %v1558_v20 = vmul.f32 %v928_v14, %v925_v12  ;;  %v2271_v22 = vld [vmem:[#allocation8 + $0x8] sm:$0xff]  ;;  %v2275_v23 = vld [vmem:[#allocation8] sm:$0xff]  ;;  %p2149_p8 = scmp.lt.s32.totalorder %s2147_s13, %s2143_s12 }
  0x36   :  { %1909 = vmatmul.mubr.msk.f32.vlgmr.msra.gmra.mxu0 %vm81_vm0, %v2231_v3  ;;  %1918 = vmatprep.subr.mxu0 %v80_v4  ;;  %v1557_v21 = vmul.f32 %v927_v15, %v924_v13 }
  0x37   :  { %1919 = vmatpush3.msra.mxu0 %v80_v4  ;;  %1922 = vmatprep.mubr.msk.f32.mxu0 %vm81_vm0, %v2227_v2  ;;  %p2150_p9 = por %p2149_p8, %p2148_p7 }
  0x38   :  { %1920 = vmatprep.subr.mxu0 %v79_v5  ;;  %1911 = vmatprep.subr.mxu1 %v2271_v22 }
  0x39   :  { %1921 = vmatpush3.msra.mxu0 %v79_v5  ;;  %1912 = vmatpush3.msra.mxu1 %v2271_v22  ;;  %p2151_p10 = pnand %p2150_p9, %p2144_p6 }
  0x3a   :  { %1923 = vmatmul.mubr.msk.f32.vlgmr.msra.gmra.mxu0 %vm81_vm0, %v2231_v3  ;;  %1932 = vmatprep.subr.mxu0 %v401_v6 }
  0x3b   :  { %1933 = vmatpush3.msra.mxu0 %v401_v6  ;;  %1936 = vmatprep.mubr.msk.f32.mxu0 %vm81_vm0, %v2227_v2 }
  0x3c   :  { %1934 = vmatprep.subr.mxu0 %v400_v7  ;;  %1913 = vmatprep.subr.mxu1 %v2275_v23 }
  0x3d   :  { %1935 = vmatpush3.msra.mxu0 %v400_v7  ;;  %1914 = vmatpush3.msra.mxu1 %v2275_v23 }
  0x3e   :  { %1937 = vmatmul.mubr.msk.f32.vlgmr.msra.gmra.mxu0 %vm81_vm0, %v2231_v3  ;;  %1946 = vmatprep.subr.mxu0 %v559_v8 }
  0x3f   :  { %1947 = vmatpush3.msra.mxu0 %v559_v8  ;;  %1950 = vmatprep.mubr.msk.f32.mxu0 %vm81_vm0, %v2227_v2 }
  0x40   :  { %1948 = vmatprep.subr.mxu0 %v558_v9  ;;  %1925 = vmatprep.subr.mxu1 %v2271_v22 }
  0x41   :  { %1949 = vmatpush3.msra.mxu0 %v558_v9 }
  0x42   :  { %1951 = vmatmul.mubr.msk.f32.vlgmr.msra.gmra.mxu0 %vm81_vm0, %v2231_v3  ;;  %1960 = vmatprep.subr.mxu0 %v717_v10 }
  0x43   :  { %1961 = vmatpush3.msra.mxu0 %v717_v10  ;;  %1964 = vmatprep.mubr.msk.f32.mxu0 %vm81_vm0, %v2227_v2 }
  0x44   :  { %1962 = vmatprep.subr.mxu0 %v716_v11 }
  0x45   :  { %1963 = vmatpush3.msra.mxu0 %v716_v11 }
  0x46   :  { %1965 = vmatmul.mubr.msk.f32.vlgmr.msra.gmra.mxu0 %vm81_vm0, %v2231_v3  ;;  %1974 = vmatprep.subr.mxu0 %v925_v12 }
  0x47   :  { %1975 = vmatpush3.msra.mxu0 %v925_v12  ;;  %1978 = vmatprep.mubr.msk.f32.mxu0 %vm81_vm0, %v2227_v2 }
  0x48   :  { %1976 = vmatprep.subr.mxu0 %v924_v13 }
  0x49   :  { %1977 = vmatpush3.msra.mxu0 %v924_v13 }
  0x4a   :  { %1979 = vmatmul.mubr.msk.f32.vlgmr.msra.gmra.mxu0 %vm81_vm0, %v2231_v3  ;;  %1988 = vmatprep.subr.mxu0 %v928_v14 }
  0x4b   :  { %1989 = vmatpush3.msra.mxu0 %v928_v14  ;;  %1992 = vmatprep.mubr.msk.f32.mxu0 %vm81_vm0, %v2227_v2 }
  0x4c   :  { %1990 = vmatprep.subr.mxu0 %v927_v15 }
  0x4d   :  { %1991 = vmatpush3.msra.mxu0 %v927_v15 }
  0x4e   :  { %1993 = vmatmul.mubr.msk.f32.vlgmr.msra.gmra.mxu0 %vm81_vm0, %v2231_v3  ;;  %2002 = vmatprep.subr.mxu0 %v1242_v16 }
  0x4f   :  { %2003 = vmatpush3.msra.mxu0 %v1242_v16  ;;  %2006 = vmatprep.mubr.msk.f32.mxu0 %vm81_vm0, %v2227_v2 }
  0x50   :  { %2004 = vmatprep.subr.mxu0 %v1241_v17 }
  0x51   :  { %2005 = vmatpush3.msra.mxu0 %v1241_v17 }
  0x52   :  { %2007 = vmatmul.mubr.msk.f32.vlgmr.msra.gmra.mxu0 %vm81_vm0, %v2231_v3  ;;  %2016 = vmatprep.subr.mxu0 %v1400_v18 }
  0x53   :  { %2017 = vmatpush3.msra.mxu0 %v1400_v18  ;;  %2020 = vmatprep.mubr.msk.f32.mxu0 %vm81_vm0, %v2227_v2 }
  0x54   :  { %2018 = vmatprep.subr.mxu0 %v1399_v19 }
  0x55   :  { %2019 = vmatpush3.msra.mxu0 %v1399_v19 }
  0x56   :  { %2021 = vmatmul.mubr.msk.f32.vlgmr.msra.gmra.mxu0 %vm81_vm0, %v2231_v3  ;;  %2030 = vmatprep.subr.mxu0 %v1558_v20 }
  0x57   :  { %2031 = vmatpush3.msra.mxu0 %v1558_v20  ;;  %2034 = vmatprep.mubr.msk.f32.mxu0 %vm81_vm0, %v2227_v2 }
  0x58   :  { %2032 = vmatprep.subr.mxu0 %v1557_v21 }
  0x59   :  { %2033 = vmatpush3.msra.mxu0 %v1557_v21 }
  0x5a   :  { %2035 = vmatmul.mubr.msk.f32.vlgmr.msra.gmra.mxu0 %vm81_vm0, %v2231_v3 }
  0xf6   :  { %v1910_v24 = vpop.f32.mrf.mxu0 }
  0xf8   :  { %v154_v25 = vpop.f32.mrf.mxu0 }
  0xf9   :  { %1915 = vmatprep.mubr.msk.f32.mxu1 %vm81_vm0, %v154_v25 }
  0xfa   :  { %1916 = vmatmul.mubr.msk.f32.vlgmr.msra.gmra.mxu1 %vm81_vm0, %v1910_v24  ;;  %v1924_v26 = vpop.f32.mrf.mxu0 }
  0xfb   :  { %1926 = vmatpush3.msra.mxu1 %v2271_v22 }
  0xfc   :  { %v310_v27 = vpop.f32.mrf.mxu0  ;;  %1927 = vmatprep.subr.mxu1 %v2275_v23 }
  0xfd   :  { %1928 = vmatpush3.msra.mxu1 %v2275_v23  ;;  %1929 = vmatprep.mubr.msk.f32.mxu1 %vm81_vm0, %v310_v27 }
  0xfe   :  { %1930 = vmatmul.mubr.msk.f32.vlgmr.msra.gmra.mxu1 %vm81_vm0, %v1924_v26  ;;  %v1938_v28 = vpop.f32.mrf.mxu0  ;;  %1939 = vmatprep.subr.mxu1 %v2271_v22 }
  0xff   :  { %1940 = vmatpush3.msra.mxu1 %v2271_v22 }
 0x100   :  { %v468_v29 = vpop.f32.mrf.mxu0  ;;  %1941 = vmatprep.subr.mxu1 %v2275_v23 }
 0x101   :  { %1942 = vmatpush3.msra.mxu1 %v2275_v23  ;;  %1943 = vmatprep.mubr.msk.f32.mxu1 %vm81_vm0, %v468_v29 }
 0x102   :  { %1944 = vmatmul.mubr.msk.f32.vlgmr.msra.gmra.mxu1 %vm81_vm0, %v1938_v28  ;;  %v1952_v30 = vpop.f32.mrf.mxu0  ;;  %1953 = vmatprep.subr.mxu1 %v2271_v22 }
 0x103   :  { %1954 = vmatpush3.msra.mxu1 %v2271_v22 }
 0x104   :  { %v626_v31 = vpop.f32.mrf.mxu0  ;;  %1955 = vmatprep.subr.mxu1 %v2275_v23 }
 0x105   :  { %1956 = vmatpush3.msra.mxu1 %v2275_v23  ;;  %1957 = vmatprep.mubr.msk.f32.mxu1 %vm81_vm0, %v626_v31 }
 0x106   :  { %1958 = vmatmul.mubr.msk.f32.vlgmr.msra.gmra.mxu1 %vm81_vm0, %v1952_v30  ;;  %v1966_v32 = vpop.f32.mrf.mxu0  ;;  %1967 = vmatprep.subr.mxu1 %v2271_v22 }
 0x107   :  { %1968 = vmatpush3.msra.mxu1 %v2271_v22 }
 0x108   :  { %v784_v33 = vpop.f32.mrf.mxu0  ;;  %1969 = vmatprep.subr.mxu1 %v2275_v23 }
 0x109   :  { %1970 = vmatpush3.msra.mxu1 %v2275_v23  ;;  %1971 = vmatprep.mubr.msk.f32.mxu1 %vm81_vm0, %v784_v33 }
 0x10a   :  { %1972 = vmatmul.mubr.msk.f32.vlgmr.msra.gmra.mxu1 %vm81_vm0, %v1966_v32  ;;  %v1980_v34 = vpop.f32.mrf.mxu0  ;;  %1981 = vmatprep.subr.mxu1 %v2271_v22 }
 0x10b   :  { %1982 = vmatpush3.msra.mxu1 %v2271_v22 }
 0x10c   :  { %v995_v35 = vpop.f32.mrf.mxu0  ;;  %1983 = vmatprep.subr.mxu1 %v2275_v23 }
 0x10d   :  { %1984 = vmatpush3.msra.mxu1 %v2275_v23  ;;  %1985 = vmatprep.mubr.msk.f32.mxu1 %vm81_vm0, %v995_v35 }
 0x10e   :  { %1986 = vmatmul.mubr.msk.f32.vlgmr.msra.gmra.mxu1 %vm81_vm0, %v1980_v34  ;;  %v1994_v36 = vpop.f32.mrf.mxu0  ;;  %1995 = vmatprep.subr.mxu1 %v2271_v22 }
 0x10f   :  { %1996 = vmatpush3.msra.mxu1 %v2271_v22 }
 0x110   :  { %v1151_v37 = vpop.f32.mrf.mxu0  ;;  %1997 = vmatprep.subr.mxu1 %v2275_v23 }
 0x111   :  { %1998 = vmatpush3.msra.mxu1 %v2275_v23  ;;  %1999 = vmatprep.mubr.msk.f32.mxu1 %vm81_vm0, %v1151_v37 }
 0x112   :  { %2000 = vmatmul.mubr.msk.f32.vlgmr.msra.gmra.mxu1 %vm81_vm0, %v1994_v36  ;;  %v2008_v38 = vpop.f32.mrf.mxu0  ;;  %2009 = vmatprep.subr.mxu1 %v2271_v22 }
 0x113   :  { %2010 = vmatpush3.msra.mxu1 %v2271_v22 }
 0x114   :  { %v1309_v39 = vpop.f32.mrf.mxu0  ;;  %2011 = vmatprep.subr.mxu1 %v2275_v23 }
 0x115   :  { %2012 = vmatpush3.msra.mxu1 %v2275_v23  ;;  %2013 = vmatprep.mubr.msk.f32.mxu1 %vm81_vm0, %v1309_v39 }
 0x116   :  { %2014 = vmatmul.mubr.msk.f32.vlgmr.msra.gmra.mxu1 %vm81_vm0, %v2008_v38  ;;  %v2022_v40 = vpop.f32.mrf.mxu0  ;;  %2023 = vmatprep.subr.mxu1 %v2271_v22 }
 0x117   :  { %2024 = vmatpush3.msra.mxu1 %v2271_v22 }
 0x118   :  { %v1467_v41 = vpop.f32.mrf.mxu0  ;;  %2025 = vmatprep.subr.mxu1 %v2275_v23 }
 0x119   :  { %2026 = vmatpush3.msra.mxu1 %v2275_v23  ;;  %2027 = vmatprep.mubr.msk.f32.mxu1 %vm81_vm0, %v1467_v41 }
 0x11a   :  { %2028 = vmatmul.mubr.msk.f32.vlgmr.msra.gmra.mxu1 %vm81_vm0, %v2022_v40  ;;  %v2036_v42 = vpop.f32.mrf.mxu0  ;;  %2037 = vmatprep.subr.mxu1 %v2271_v22 }
 0x11b   :  { %2038 = vmatpush3.msra.mxu1 %v2271_v22 }
 0x11c   :  { %v1625_v43 = vpop.f32.mrf.mxu0  ;;  %2039 = vmatprep.subr.mxu1 %v2275_v23 }
 0x11d   :  { %2040 = vmatpush3.msra.mxu1 %v2275_v23  ;;  %2041 = vmatprep.mubr.msk.f32.mxu1 %vm81_vm0, %v1625_v43 }
 0x11e   :  { %2042 = vmatmul.mubr.msk.f32.vlgmr.msra.gmra.mxu1 %vm81_vm0, %v2036_v42 }
 0x1ba   :  { %v1917_v44 = vpop.f32.mrf.mxu1 }
 0x1bb   :  { %v875_v51 = vmul.f32 %v1917_v44, %v1917_v44 }
 0x1bc   :  { %v235_v45 = vpop.f32.mrf.mxu1 }
 0x1bd   :  { %v874_v54 = vmul.f32 %v235_v45, %v235_v45 }
 0x1be   :  { %v1931_v46 = vpop.f32.mrf.mxu1 }
 0x1bf   :  { %v877_v49 = vmul.f32 %v1931_v46, %v1931_v46  ;;  %v879_v7 = vmul.f32 %v1931_v46, %v1917_v44 }
 0x1c0   :  { %v391_v47 = vpop.f32.mrf.mxu1 }
 0x1c1   :  { %v876_v52 = vmul.f32 %v391_v47, %v391_v47  ;;  %v897_v55 = vadd.f32 %v877_v49, %v875_v51  ;;  %v878_v8 = vmul.f32 %v391_v47, %v235_v45  ;;  %v887_v18 = vmul.f32 2.0, %v879_v7 }
 0x1c2   :  { %v1945_v48 = vpop.f32.mrf.mxu1 }
 0x1c3   :  { %v881_v56 = vsub.f32 %v1945_v48, %v875_v51  ;;  %v896_v59 = vadd.f32 %v876_v52, %v874_v54  ;;  %v899_v0 = vadd.f32 0.0001, %v897_v55  ;;  %v886_v19 = vmul.f32 2.0, %v878_v8 }
 0x1c4   :  { %v549_v50 = vpop.f32.mrf.mxu1  ;;  %v889_v27 = vadd.f32 0.0001, %v887_v18 }
 0x1c5   :  { %v880_v60 = vsub.f32 %v549_v50, %v874_v54  ;;  %v898_v4 = vadd.f32 0.0001, %v896_v59  ;;  %v888_v28 = vadd.f32 0.0001, %v886_v19 }
 0x1c6   :  { %v1959_v53 = vpop.f32.mrf.mxu1 }
 0x1c7   :  { %v883_v57 = vsub.f32 %v1959_v53, %v877_v49 }
 0x1c8   :  { %v707_v58 = vpop.f32.mrf.mxu1 }
 0x1c9   :  { %v901_v61 = vadd.f32 %v883_v57, %v881_v56  ;;  %v882_v62 = vsub.f32 %v707_v58, %v876_v52 }
 0x1ca   :  { %v1973_v63 = vpop.f32.mrf.mxu1 }
 0x1cb   :  { %v903_v1 = vadd.f32 0.0009, %v901_v61  ;;  %v900_v2 = vadd.f32 %v882_v62, %v880_v60  ;;  %v885_v11 = vsub.f32 %v1973_v63, %v879_v7 }
 0x1cc   :  { %v865_v3 = vpop.f32.mrf.mxu1 }
 0x1cd   :  { %v905_v5 = vmul.f32 %v903_v1, %v899_v0  ;;  %v902_v6 = vadd.f32 0.0009, %v900_v2  ;;  %v884_v12 = vsub.f32 %v865_v3, %v878_v8  ;;  %v891_v15 = vmul.f32 2.0, %v885_v11 }
 0x1ce   :  { %v1987_v9 = vpop.f32.mrf.mxu1 }
 0x1cf   :  { %2055 = vrcp.f32 %v905_v5  ;;  %v904_v10 = vmul.f32 %v902_v6, %v898_v4  ;;  %v890_v16 = vmul.f32 2.0, %v884_v12  ;;  %v893_v22 = vadd.f32 0.0009, %v891_v15 }
 0x1d0   :  { %v1076_v13 = vpop.f32.mrf.mxu1  ;;  %v1716_v24 = vmul.f32 %v1987_v9, %v1987_v9 }
 0x1d1   :  { %2057 = vrcp.f32 %v904_v10  ;;  %v892_v23 = vadd.f32 0.0009, %v890_v16  ;;  %v1715_v31 = vmul.f32 %v1076_v13, %v1076_v13  ;;  %v895_v35 = vmul.f32 %v893_v22, %v889_v27 }
 0x1d2   :  { %v2001_v14 = vpop.f32.mrf.mxu1 }
 0x1d3   :  { %v1718_v20 = vmul.f32 %v2001_v14, %v2001_v14  ;;  %v894_v36 = vmul.f32 %v892_v23, %v888_v28  ;;  %v1720_v49 = vmul.f32 %v2001_v14, %v1987_v9 }
 0x1d4   :  { %v1232_v17 = vpop.f32.mrf.mxu1 }
 0x1d5   :  { %v1717_v26 = vmul.f32 %v1232_v17, %v1232_v17  ;;  %v1738_v29 = vadd.f32 %v1718_v20, %v1716_v24  ;;  %v1719_v53 = vmul.f32 %v1232_v17, %v1076_v13  ;;  %v1728_v62 = vmul.f32 2.0, %v1720_v49 }
 0x1d6   :  { %v2015_v21 = vpop.f32.mrf.mxu1 }
 0x1d7   :  { %v1722_v32 = vsub.f32 %v2015_v21, %v1716_v24  ;;  %v1737_v38 = vadd.f32 %v1717_v26, %v1715_v31  ;;  %v1740_v43 = vadd.f32 0.0001, %v1738_v29  ;;  %v1727_v0 = vmul.f32 2.0, %v1719_v53 }
 0x1d8   :  { %v1390_v25 = vpop.f32.mrf.mxu1  ;;  %v1730_v2 = vadd.f32 0.0001, %v1728_v62 }
 0x1d9   :  { %v1721_v39 = vsub.f32 %v1390_v25, %v1715_v31  ;;  %v1739_v50 = vadd.f32 0.0001, %v1737_v38  ;;  %v1729_v4 = vadd.f32 0.0001, %v1727_v0 }
 0x1da   :  { %v2029_v30 = vpop.f32.mrf.mxu1 }
 0x1db   :  { %v1724_v33 = vsub.f32 %v2029_v30, %v1718_v20 }
 0x1dc   :  { %v2056_v34 = vpop.eup %2055  ;;  %v1548_v37 = vpop.f32.mrf.mxu1 }
 0x1dd   :  { %v1742_v40 = vadd.f32 %v1724_v33, %v1722_v32  ;;  %v1723_v41 = vsub.f32 %v1548_v37, %v1717_v26  ;;  %v909_v48 = vmul.f32 %v2056_v34, %v895_v35 }
 0x1de   :  { %v2058_v42 = vpop.eup %2057  ;;  %v2043_v44 = vpop.f32.mrf.mxu1 }
 0x1df   :  { %v1744_v45 = vadd.f32 0.0009, %v1742_v40  ;;  %v1741_v46 = vadd.f32 %v1723_v41, %v1721_v39  ;;  %v908_v47 = vmul.f32 %v2058_v42, %v894_v36  ;;  %v1726_v57 = vsub.f32 %v2043_v44, %v1720_v49 }
 0x1e0   :  { %v1706_v54 = vpop.f32.mrf.mxu1  ;;  %v911_v58 = vsel %vm81_vm0, %v909_v48, 0.0 }
 0x1e1   :  { %v1746_v51 = vmul.f32 %v1744_v45, %v1740_v43  ;;  %v1743_v52 = vadd.f32 0.0009, %v1741_v46  ;;  %v910_v55 = vsel %vm81_vm0, %v908_v47, 0.0  ;;  %v1725_v60 = vsub.f32 %v1706_v54, %v1719_v53 }
 0x1e2   :  { %v912_v59 = vadd.f32 %v911_v58, %v910_v55  ;;  %v1732_v61 = vmul.f32 2.0, %v1726_v57 }
 0x1e3   :  { %2059 = vrcp.f32 %v1746_v51  ;;  %v1745_v56 = vmul.f32 %v1743_v52, %v1739_v50  ;;  %v1731_v63 = vmul.f32 2.0, %v1725_v60 }
 0x1e4   :  { %913 = vadd.xlane.f32.xlu0 %v912_v59  ;;  %v1734_v1 = vadd.f32 0.0009, %v1732_v61 }
 0x1e5   :  { %2061 = vrcp.f32 %v1745_v56  ;;  %v1733_v3 = vadd.f32 0.0009, %v1731_v63 }
 0x1e6   :  { %v1736_v5 = vmul.f32 %v1734_v1, %v1730_v2 }
 0x1e7   :  { %v1735_v7 = vmul.f32 %v1733_v3, %v1729_v4 }
 0x1f0   :  { %v2060_v6 = vpop.eup %2059 }
 0x1f1   :  { %v1750_v8 = vmul.f32 %v2060_v6, %v1736_v5 }
 0x1f2   :  { %v2062_v9 = vpop.eup %2061 }
 0x1f3   :  { %v1749_v10 = vmul.f32 %v2062_v9, %v1735_v7  ;;  %v1752_v12 = vsel %vm81_vm0, %v1750_v8, 0.0 }
 0x1f5   :  { %v1751_v11 = vsel %vm81_vm0, %v1749_v10, 0.0 }
 0x1f6   :  { %v1753_v13 = vadd.f32 %v1752_v12, %v1751_v11 }
 0x1f8   :  { %1754 = vadd.xlane.f32.xlu0 %v1753_v13 }
 0x26d   :  { %v914_v14 = vpop.xlane.xlu0 %913 }
 0x26e   :  { %v915_v15 = vrot.slane %v914_v14, 4 }
 0x270   :  { %v916_v16 = vadd.f32 %v915_v15, %v914_v14 }
 0x272   :  { %v917_v17 = vrot.slane %v916_v16, 2 }
 0x274   :  { %v918_v18 = vadd.f32 %v917_v17, %v916_v16 }
 0x276   :  { %v919_v19 = vrot.slane %v918_v18, 1 }
 0x278   :  { %v920_v20 = vadd.f32 %v919_v19, %v918_v18 }
 0x27a   :  { %2044 = vpush %v920_v20 }
 0x281   :  { %v1755_v21 = vpop.xlane.xlu0 %1754 }
 0x282   :  { %v1756_v22 = vrot.slane %v1755_v21, 4 }
 0x284   :  { %v1757_v23 = vadd.f32 %v1756_v22, %v1755_v21 }
 0x286   :  { %v1758_v24 = vrot.slane %v1757_v23, 2 }
 0x288   :  { %v1759_v25 = vadd.f32 %v1758_v24, %v1757_v23 }
 0x28a   :  { %v1760_v26 = vrot.slane %v1759_v25, 1 }
 0x28c   :  { %v1761_v27 = vadd.f32 %v1760_v26, %v1759_v25 }
 0x28e   :  { %2046 = vpush %v1761_v27 }
 0x2ab   :  { %s2045_s2 = spop %2044 }
 0x2bf   :  { %s2047_s10 = spop %2046 }
 0x2c0   :  { %s1763_s11 = sadd.f32 %s2047_s10, %s2045_s2 }
 0x2c2   :  { %v1764_v28 = vstv %s1763_s11 }
 0x2c3   :  { %1766 = vst.msk [vmem:[#allocation10] sm:$0x1] %vm1765_vm1, %v1764_v28 }
 0x2c4   :  { %2154 = shalt.err (!%p2151_p10)
}
 0x2c5   :  { %1776 = dma.vmem_to_hbm [thread:$0]  %s1774_s9, 16, %s2346_s4, [#allocation4]  }
 0x2c6   :  { %2169 = dma.done.wait [#allocation4], 16  }
 0x2c7   :  { %2170 = vsyncadd [#allocation4], 4294967280 }
 0x2c8   :  { %1780 = vsyncpa [#allocation3], 1 }
 0x2c9   :  { %1781 = vsyncpa [#allocation6], 1 }
 0x2ca   :  { %1782 = vsyncpa [#allocation9], 1 }
 0x2cb   :  { %1783 = vsyncpa [#allocation4], 1 }

</bundles_post_ra>
